<compile_context>
chip_gen: v5e
topology: v5e:2x2
jax: 0.10.0
libtpu: 0.0.40
codegen_flags: <defaults>
</compile_context>

<pallas_src>
import functools

import jax
import jax.numpy as jnp
from jax.experimental import pallas as pl
from jax.experimental.pallas import tpu as pltpu


def _round_up(x, m):
    return ((x + m - 1) // m) * m


def dnn_kernel(x_ref, w1_ref, b1_ref, w2_ref, b2_ref, w3_ref, b3_ref, o_ref):
    # Three fused matmuls + bias + ReLU. Matmul inputs are bf16, accumulation
    # and the bias/ReLU epilogues are f32.
    h = jnp.dot(x_ref[...], w1_ref[...], preferred_element_type=jnp.float32)
    h = jnp.maximum(h + b1_ref[...], 0.0)

    h = jnp.dot(h.astype(w2_ref.dtype), w2_ref[...],
                preferred_element_type=jnp.float32)
    h = jnp.maximum(h + b2_ref[...], 0.0)

    h = jnp.dot(h.astype(w3_ref.dtype), w3_ref[...],
                preferred_element_type=jnp.float32)
    h = jnp.maximum(h + b3_ref[...], 0.0)

    o_ref[...] = h.astype(o_ref.dtype)


@functools.partial(jax.jit, static_argnames=("block_b",))
def dnn_forward(x, w1, b1, w2, b2, w3, b3, *, block_b=None):
    """Forward pass of the 3-layer MLP.

    x:  (B, input_size)  float32
    wN: (in, out)        float32  (already transposed vs. PyTorch's (out, in))
    bN: (1, out)         float32
    Returns (B, output_size) float32.
    """
    B, in_size = x.shape
    hidden = w1.shape[1]
    out_size = w3.shape[1]

    # --- batch tiling: multiple of 16 (bf16 sublane packing), capped so large
    # batches give a multi-step pipelined grid (and megacore sharding on v7x).
    if block_b is None:
        block_b = min(256, _round_up(B, 16))
    block_b = _round_up(block_b, 16)
    Bp = _round_up(B, block_b)

    # --- lane-dense feature padding (multiples of 128).
    in_p = _round_up(in_size, 128)
    hid_p = _round_up(hidden, 128)
    out_p = _round_up(out_size, 128)

    f32 = jnp.float32
    bf16 = jnp.bfloat16

    # Zero-pad; zero weight rows/cols + zero bias cols are exact no-ops.
    x_p = jnp.pad(x, ((0, Bp - B), (0, in_p - in_size))).astype(bf16)
    w1_p = jnp.pad(w1, ((0, in_p - in_size), (0, hid_p - hidden))).astype(bf16)
    b1_p = jnp.pad(b1, ((0, 0), (0, hid_p - hidden))).astype(f32)
    w2_p = jnp.pad(w2, ((0, hid_p - hidden), (0, hid_p - hidden))).astype(bf16)
    b2_p = jnp.pad(b2, ((0, 0), (0, hid_p - hidden))).astype(f32)
    w3_p = jnp.pad(w3, ((0, hid_p - hidden), (0, out_p - out_size))).astype(bf16)
    b3_p = jnp.pad(b3, ((0, 0), (0, out_p - out_size))).astype(f32)

    grid = (Bp // block_b,)

    # --- VMEM footprint estimate (double-buffered pipeline buffers); only
    # raise the scoped limit when the default 32 MiB would be exceeded.
    # TODO(synk): for hidden sizes where a full weight no longer fits VMEM,
    # switch to a (batch, K-chunk) grid with a scratch accumulator instead of
    # whole-weight blocks.
    est_bytes = (
        2 * (in_p * hid_p + hid_p * hid_p + hid_p * out_p) * 2       # bf16 weights
        + 2 * (2 * hid_p + out_p) * 4                                 # f32 biases
        + 2 * block_b * in_p * 2                                      # x tiles (bf16)
        + 2 * block_b * out_p * 4                                     # out tiles (f32)
        + 3 * block_b * hid_p * 4                                     # live intermediates
    )
    compiler_kwargs = dict(dimension_semantics=("parallel",))
    if est_bytes > 32 * 1024 * 1024:
        compiler_kwargs["vmem_limit_bytes"] = min(
            int(est_bytes * 5 // 4), 100 * 1024 * 1024)

    out_padded = pl.pallas_call(
        dnn_kernel,
        out_shape=jax.ShapeDtypeStruct((Bp, out_p), f32),
        grid_spec=pltpu.PrefetchScalarGridSpec(
            num_scalar_prefetch=0,
            grid=grid,
            in_specs=[
                # batch-tiled activations
                pl.BlockSpec((block_b, in_p), lambda i: (i, 0)),
                # weights / biases: full arrays, same block every grid step
                pl.BlockSpec((in_p, hid_p), lambda i: (0, 0)),
                pl.BlockSpec((1, hid_p), lambda i: (0, 0)),
                pl.BlockSpec((hid_p, hid_p), lambda i: (0, 0)),
                pl.BlockSpec((1, hid_p), lambda i: (0, 0)),
                pl.BlockSpec((hid_p, out_p), lambda i: (0, 0)),
                pl.BlockSpec((1, out_p), lambda i: (0, 0)),
            ],
            out_specs=pl.BlockSpec((block_b, out_p), lambda i: (i, 0)),
        ),
        compiler_params=pltpu.CompilerParams(**compiler_kwargs),
    )(x_p, w1_p, b1_p, w2_p, b2_p, w3_p, b3_p)

    # Strip batch / lane padding.
    return out_padded[:B, :out_size]


def init_linear_params(key, in_features, out_features):
    """Deterministic init mimicking PyTorch nn.Linear default (uniform)."""
    kw, kb = jax.random.split(key)
    bound = 1.0 / jnp.sqrt(jnp.float32(in_features))
    # Stored as (in, out) so the kernel can do x @ W directly.
    w = jax.random.uniform(kw, (in_features, out_features), jnp.float32,
                           minval=-bound, maxval=bound)
    b = jax.random.uniform(kb, (1, out_features), jnp.float32,
                           minval=-bound, maxval=bound)
    return w, b


def reference_forward(x, w1, b1, w2, b2, w3, b3):
    h = jnp.maximum(x @ w1 + b1, 0.0)
    h = jnp.maximum(h @ w2 + b2, 0.0)
    return jnp.maximum(h @ w3 + b3, 0.0)


if __name__ == "__main__":
    # Small shapes consistent with the module's forward.
    batch, input_size, hidden_size, output_size = 8, 32, 32, 16

    key = jax.random.PRNGKey(0)
    kx, k1, k2, k3 = jax.random.split(key, 4)

    x = jax.random.normal(kx, (batch, input_size), jnp.float32)
    w1, b1 = init_linear_params(k1, input_size, hidden_size)
    w2, b2 = init_linear_params(k2, hidden_size, hidden_size)
    w3, b3 = init_linear_params(k3, hidden_size, output_size)

    out = dnn_forward(x, w1, b1, w2, b2, w3, b3)
    out = jax.block_until_ready(out)

    ref = reference_forward(x, w1, b1, w2, b2, w3, b3)
    assert out.shape == (batch, output_size)
    # bf16 matmul inputs with f32 accumulation: allow ~1e-2 tolerance vs f32 ref.
    assert jnp.allclose(out, ref, atol=2e-2, rtol=2e-2), "mismatch vs reference"

    print("KERNEL_OK")
</pallas_src>

<mosaic_0001>
module attributes {stable_mosaic.version = 11 : i64} {
  func.func @dnn_kernel(%arg0: i32, %arg1: memref<16x128xbf16, #tpu.memory_space<vmem>>, %arg2: memref<128x128xbf16, #tpu.memory_space<vmem>>, %arg3: memref<1x128xf32, #tpu.memory_space<vmem>>, %arg4: memref<128x128xbf16, #tpu.memory_space<vmem>>, %arg5: memref<1x128xf32, #tpu.memory_space<vmem>>, %arg6: memref<128x128xbf16, #tpu.memory_space<vmem>>, %arg7: memref<1x128xf32, #tpu.memory_space<vmem>>, %arg8: memref<16x128xf32, #tpu.memory_space<vmem>>) attributes {dimension_semantics = [#tpu.dimension_semantics<parallel>], iteration_bounds = array<i64: 1>, scalar_prefetch = 0 : i64, scratch_operands = 0 : i64, tpu.core_type = #tpu.core_type<tc>, window_params = [{transform_indices = @transform_0, window_bounds = array<i64: 16, 128>}, {pipeline_mode = #tpu.pipeline_mode<synchronous>, transform_indices = @transform_1, window_bounds = array<i64: 128, 128>}, {pipeline_mode = #tpu.pipeline_mode<synchronous>, transform_indices = @transform_2, window_bounds = array<i64: 1, 128>}, {pipeline_mode = #tpu.pipeline_mode<synchronous>, transform_indices = @transform_3, window_bounds = array<i64: 128, 128>}, {pipeline_mode = #tpu.pipeline_mode<synchronous>, transform_indices = @transform_4, window_bounds = array<i64: 1, 128>}, {pipeline_mode = #tpu.pipeline_mode<synchronous>, transform_indices = @transform_5, window_bounds = array<i64: 128, 128>}, {pipeline_mode = #tpu.pipeline_mode<synchronous>, transform_indices = @transform_6, window_bounds = array<i64: 1, 128>}, {transform_indices = @transform_7, window_bounds = array<i64: 16, 128>}]} {
    %c0 = arith.constant 0 : index
    %c0_0 = arith.constant 0 : index
    %0 = vector.load %arg1[%c0, %c0_0] : memref<16x128xbf16, #tpu.memory_space<vmem>>, vector<16x128xbf16>
    %c0_1 = arith.constant 0 : index
    %c0_2 = arith.constant 0 : index
    %1 = vector.load %arg2[%c0_1, %c0_2] : memref<128x128xbf16, #tpu.memory_space<vmem>>, vector<128x128xbf16>
    %cst = arith.constant dense<0.000000e+00> : vector<16x128xf32>
    %2 = tpu.matmul %0, %1, %cst {dimension_numbers = #tpu.dot_dimension_numbers<[1], [0], [0], [1], [0, 0, 1, 1], [], []>} : vector<16x128xbf16>, vector<128x128xbf16>, vector<16x128xf32> -> vector<16x128xf32>
    %c0_3 = arith.constant 0 : index
    %c0_4 = arith.constant 0 : index
    %3 = vector.load %arg3[%c0_3, %c0_4] : memref<1x128xf32, #tpu.memory_space<vmem>>, vector<1x128xf32>
    %4 = vector.broadcast %3 : vector<1x128xf32> to vector<16x128xf32>
    %5 = arith.addf %2, %4 : vector<16x128xf32>
    %cst_5 = arith.constant 0.000000e+00 : f32
    %6 = vector.broadcast %cst_5 : f32 to vector<16x128xf32>
    %7 = arith.maximumf %5, %6 : vector<16x128xf32>
    %8 = arith.truncf %7 : vector<16x128xf32> to vector<16x128xbf16>
    %c0_6 = arith.constant 0 : index
    %c0_7 = arith.constant 0 : index
    %9 = vector.load %arg4[%c0_6, %c0_7] : memref<128x128xbf16, #tpu.memory_space<vmem>>, vector<128x128xbf16>
    %cst_8 = arith.constant dense<0.000000e+00> : vector<16x128xf32>
    %10 = tpu.matmul %8, %9, %cst_8 {dimension_numbers = #tpu.dot_dimension_numbers<[1], [0], [0], [1], [0, 0, 1, 1], [], []>} : vector<16x128xbf16>, vector<128x128xbf16>, vector<16x128xf32> -> vector<16x128xf32>
    %c0_9 = arith.constant 0 : index
    %c0_10 = arith.constant 0 : index
    %11 = vector.load %arg5[%c0_9, %c0_10] : memref<1x128xf32, #tpu.memory_space<vmem>>, vector<1x128xf32>
    %12 = vector.broadcast %11 : vector<1x128xf32> to vector<16x128xf32>
    %13 = arith.addf %10, %12 : vector<16x128xf32>
    %cst_11 = arith.constant 0.000000e+00 : f32
    %14 = vector.broadcast %cst_11 : f32 to vector<16x128xf32>
    %15 = arith.maximumf %13, %14 : vector<16x128xf32>
    %16 = arith.truncf %15 : vector<16x128xf32> to vector<16x128xbf16>
    %c0_12 = arith.constant 0 : index
    %c0_13 = arith.constant 0 : index
    %17 = vector.load %arg6[%c0_12, %c0_13] : memref<128x128xbf16, #tpu.memory_space<vmem>>, vector<128x128xbf16>
    %cst_14 = arith.constant dense<0.000000e+00> : vector<16x128xf32>
    %18 = tpu.matmul %16, %17, %cst_14 {dimension_numbers = #tpu.dot_dimension_numbers<[1], [0], [0], [1], [0, 0, 1, 1], [], []>} : vector<16x128xbf16>, vector<128x128xbf16>, vector<16x128xf32> -> vector<16x128xf32>
    %c0_15 = arith.constant 0 : index
    %c0_16 = arith.constant 0 : index
    %19 = vector.load %arg7[%c0_15, %c0_16] : memref<1x128xf32, #tpu.memory_space<vmem>>, vector<1x128xf32>
    %20 = vector.broadcast %19 : vector<1x128xf32> to vector<16x128xf32>
    %21 = arith.addf %18, %20 : vector<16x128xf32>
    %cst_17 = arith.constant 0.000000e+00 : f32
    %22 = vector.broadcast %cst_17 : f32 to vector<16x128xf32>
    %23 = arith.maximumf %21, %22 : vector<16x128xf32>
    %c0_18 = arith.constant 0 : index
    %c0_19 = arith.constant 0 : index
    %24 = vector.load %arg8[%c0_18, %c0_19] : memref<16x128xf32, #tpu.memory_space<vmem>>, vector<16x128xf32>
    tpu.vector_store %arg8[%c0_18, %c0_19], %23 {strides = array<i32>} : memref<16x128xf32, #tpu.memory_space<vmem>>, vector<16x128xf32>,
    return
  }
  func.func @transform_0(%arg0: i32) -> (i32, i32) {
    %c0_i32 = arith.constant 0 : i32
    %c0_i32_0 = arith.constant 0 : i32
    return %arg0, %c0_i32 : i32, i32
  }
  func.func @transform_1(%arg0: i32) -> (i32, i32) {
    %c0_i32 = arith.constant 0 : i32
    %c0_i32_0 = arith.constant 0 : i32
    %c0_i32_1 = arith.constant 0 : i32
    return %c0_i32, %c0_i32_0 : i32, i32
  }
  func.func @transform_2(%arg0: i32) -> (i32, i32) {
    %c0_i32 = arith.constant 0 : i32
    %c0_i32_0 = arith.constant 0 : i32
    %c0_i32_1 = arith.constant 0 : i32
    return %c0_i32, %c0_i32_0 : i32, i32
  }
  func.func @transform_3(%arg0: i32) -> (i32, i32) {
    %c0_i32 = arith.constant 0 : i32
    %c0_i32_0 = arith.constant 0 : i32
    %c0_i32_1 = arith.constant 0 : i32
    return %c0_i32, %c0_i32_0 : i32, i32
  }
  func.func @transform_4(%arg0: i32) -> (i32, i32) {
    %c0_i32 = arith.constant 0 : i32
    %c0_i32_0 = arith.constant 0 : i32
    %c0_i32_1 = arith.constant 0 : i32
    return %c0_i32, %c0_i32_0 : i32, i32
  }
  func.func @transform_5(%arg0: i32) -> (i32, i32) {
    %c0_i32 = arith.constant 0 : i32
    %c0_i32_0 = arith.constant 0 : i32
    %c0_i32_1 = arith.constant 0 : i32
    return %c0_i32, %c0_i32_0 : i32, i32
  }
  func.func @transform_6(%arg0: i32) -> (i32, i32) {
    %c0_i32 = arith.constant 0 : i32
    %c0_i32_0 = arith.constant 0 : i32
    %c0_i32_1 = arith.constant 0 : i32
    return %c0_i32, %c0_i32_0 : i32, i32
  }
  func.func @transform_7(%arg0: i32) -> (i32, i32) {
    %c0_i32 = arith.constant 0 : i32
    %c0_i32_0 = arith.constant 0 : i32
    return %arg0, %c0_i32 : i32, i32
  }
}

</mosaic_0001>

<bundles_post_ra>
// kernel: dnn_forward.1
= control target key start
LH: loop header
LB: loop body
LE: loop exit
PB: predicated region body
PF: predicated region fallthrough
CT: control target
= control target key end

     0   :  { %s552_s1 = inlined_call_operand.vmem [shape: bf16[128,128], index: 1, kind: input, shape index: {}]   ;;  %s553_s3 = inlined_call_operand.vmem [shape: bf16[128,128], index: 3, kind: input, shape index: {}]   ;;  %s554_s2 = inlined_call_operand.vmem [shape: f32[1,128], index: 2, kind: input, shape index: {}]   ;;  %s555_s0 = inlined_call_operand.vmem [shape: bf16[16,128], index: 0, kind: input, shape index: {}]   ;;  %s556_s4 = inlined_call_operand.vmem [shape: f32[1,128], index: 4, kind: input, shape index: {}]   ;;  %s557_s5 = inlined_call_operand.vmem [shape: bf16[128,128], index: 5, kind: input, shape index: {}]   ;;  %s558_s6 = inlined_call_operand.vmem [shape: f32[1,128], index: 6, kind: input, shape index: {}]   ;;  %s559_s7 = inlined_call_operand.vmem [shape: f32[16,128], index: 7, kind: output, shape index: {}]  }
   0x1   :  { %v402_v0 = vld [vmem:[%s552_s1 + $0x38] sm:$0xff]  ;;  %v401_v1 = vld [vmem:[%s552_s1 + $0x30] sm:$0xff]  ;;  %v400_v4 = vld [vmem:[%s552_s1 + $0x28] sm:$0xff] }
   0x2   :  { %102 = vmatpush.bf16.msra.mxu0 %v402_v0  ;;  %v410_v2 = vld [vmem:[%s553_s3 + $0x38] sm:$0xff]  ;;  %v409_v3 = vld [vmem:[%s553_s3 + $0x30] sm:$0xff]  ;;  %v408_v5 = vld [vmem:[%s553_s3 + $0x28] sm:$0xff] }
   0x3   :  { %187 = vmatpush.bf16.msra.mxu1 %v410_v2  ;;  %v399_v6 = vld [vmem:[%s552_s1 + $0x20] sm:$0xff]  ;;  %v398_v8 = vld [vmem:[%s552_s1 + $0x18] sm:$0xff]  ;;  %v397_v9 = vld [vmem:[%s552_s1 + $0x10] sm:$0xff] }
   0x4   :  { %v407_v7 = vld [vmem:[%s553_s3 + $0x20] sm:$0xff]  ;;  %v396_v10 = vld [vmem:[%s552_s1 + $0x8] sm:$0xff]  ;;  %v406_v13 = vld [vmem:[%s553_s3 + $0x18] sm:$0xff] }
   0x5   :  { %v395_v11 = vld [vmem:[%s552_s1] sm:$0xff]  ;;  %v405_v14 = vld [vmem:[%s553_s3 + $0x10] sm:$0xff]  ;;  %v404_v15 = vld [vmem:[%s553_s3 + $0x8] sm:$0xff] }
   0x6   :  { %103 = vmatpush.bf16.msra.mxu0 %v401_v1  ;;  %v394_v12 = vld [vmem:[%s555_s0] sm:$0xff]  ;;  %v418_v17 = vld [vmem:[%s557_s5 + $0x38] sm:$0xff]  ;;  %v417_v18 = vld [vmem:[%s557_s5 + $0x30] sm:$0xff] }
   0x7   :  { %188 = vmatpush.bf16.msra.mxu1 %v409_v3  ;;  %v403_v16 = vld [vmem:[%s553_s3] sm:$0xff]  ;;  %272 = vmatpush.bf16.msra.mxu2 %v418_v17  ;;  %v416_v19 = vld [vmem:[%s557_s5 + $0x28] sm:$0xff]  ;;  %v414_v29 = vld [vmem:[%s557_s5 + $0x18] sm:$0xff] }
   0x8   :  { %v415_v20 = vld [vmem:[%s557_s5 + $0x20] sm:$0xff]  ;;  %v413_v30 = vld [vmem:[%s557_s5 + $0x10] sm:$0xff]  ;;  %v412_v31 = vld [vmem:[%s557_s5 + $0x8] sm:$0xff] }
   0x9   :  { %v419_v22 = vld [vmem:[%s554_s2] ss:$0 sm:$0xff] }
   0xa   :  { %104 = vmatpush.bf16.msra.mxu0 %v400_v4  ;;  %v411_v32 = vld [vmem:[%s557_s5] sm:$0xff] }
   0xb   :  { %189 = vmatpush.bf16.msra.mxu1 %v408_v5  ;;  %273 = vmatpush.bf16.msra.mxu2 %v417_v18  ;;  %v420_v34 = vld [vmem:[%s556_s4] ss:$0 sm:$0xff] }
   0xc   :  { %v421_v41 = vld [vmem:[%s558_s6] ss:$0 sm:$0xff] }
   0xe   :  { %105 = vmatpush.bf16.msra.mxu0 %v399_v6 }
   0xf   :  { %190 = vmatpush.bf16.msra.mxu1 %v407_v7  ;;  %274 = vmatpush.bf16.msra.mxu2 %v416_v19 }
  0x12   :  { %106 = vmatpush.bf16.msra.mxu0 %v398_v8 }
  0x13   :  { %191 = vmatpush.bf16.msra.mxu1 %v406_v13  ;;  %275 = vmatpush.bf16.msra.mxu2 %v415_v20 }
  0x16   :  { %107 = vmatpush.bf16.msra.mxu0 %v397_v9 }
  0x17   :  { %192 = vmatpush.bf16.msra.mxu1 %v405_v14  ;;  %276 = vmatpush.bf16.msra.mxu2 %v414_v29 }
  0x1a   :  { %108 = vmatpush.bf16.msra.mxu0 %v396_v10 }
  0x1b   :  { %193 = vmatpush.bf16.msra.mxu1 %v404_v15  ;;  %277 = vmatpush.bf16.msra.mxu2 %v413_v30 }
  0x1e   :  { %109 = vmatpush.bf16.msra.mxu0 %v395_v11 }
  0x1f   :  { %194 = vmatpush.bf16.msra.mxu1 %v403_v16  ;;  %278 = vmatpush.bf16.msra.mxu2 %v412_v31 }
  0x21   :  { %110 = vmatmul.bf16.vlgmr.msra.gmra.mxu0 %v394_v12 }
  0x23   :  { %279 = vmatpush.bf16.msra.mxu2 %v411_v32 }
  0x9e   :  { %v111_v21 = vpop.f32.mrf.mxu0 }
  0x9f   :  { %v112_v23 = vadd.f32 %v419_v22, %v111_v21 }
  0xa1   :  { %v116_v26 = vmax.f32 %v112_v23, 0.0 }
  0xa6   :  { %v113_v24 = vpop.f32.mrf.mxu0 }
  0xa7   :  { %v114_v25 = vadd.f32 %v419_v22, %v113_v24 }
  0xa9   :  { %v117_v27 = vmax.f32 %v114_v25, 0.0 }
  0xab   :  { %v118_v28 = vpack.c.bf16 %v117_v27, %v116_v26 }
  0xad   :  { %195 = vmatmul.bf16.vlgmr.msra.gmra.mxu1 %v118_v28 }
 0x12a   :  { %v196_v33 = vpop.f32.mrf.mxu1 }
 0x12b   :  { %v197_v35 = vadd.f32 %v420_v34, %v196_v33 }
 0x12d   :  { %v201_v38 = vmax.f32 %v197_v35, 0.0 }
 0x132   :  { %v198_v36 = vpop.f32.mrf.mxu1 }
 0x133   :  { %v199_v37 = vadd.f32 %v420_v34, %v198_v36 }
 0x135   :  { %v202_v39 = vmax.f32 %v199_v37, 0.0 }
 0x137   :  { %v203_v40 = vpack.c.bf16 %v202_v39, %v201_v38 }
 0x139   :  { %280 = vmatmul.bf16.vlgmr.msra.gmra.mxu2 %v203_v40 }
 0x1bc   :  { %v281_v42 = vpop.f32.mrf.mxu2 }
 0x1bd   :  { %v282_v43 = vadd.f32 %v421_v41, %v281_v42 }
 0x1bf   :  { %v286_v44 = vmax.f32 %v282_v43, 0.0 }
 0x1c1   :  { %288 = vst [vmem:[%s559_s7] sm:$0xff] %v286_v44 }
 0x1c4   :  { %v283_v45 = vpop.f32.mrf.mxu2 }
 0x1c5   :  { %v284_v46 = vadd.f32 %v421_v41, %v283_v45 }
 0x1c7   :  { %v287_v47 = vmax.f32 %v284_v46, 0.0 }
 0x1c9   :  { %289 = vst [vmem:[%s559_s7 + $0x8] sm:$0xff] %v287_v47 }

</bundles_post_ra>
